<compile_context>
chip_gen: v7x
topology: tpu7x:2x2x1
jax: 0.10.0
libtpu: 0.0.40
codegen_flags: <defaults>
</compile_context>

<pallas_src>
import functools

import jax
import jax.numpy as jnp
from jax.experimental import pallas as pl
from jax.experimental.pallas import tpu as pltpu


def _round_up(x, m):
    return ((x + m - 1) // m) * m


# ----------------------------------------------------------------------------
# Pallas kernel 1: tiled matmul (bf16 inputs, f32 accum) + bias
#                  + optional residual add + optional ReLU fused in epilogue
# ----------------------------------------------------------------------------
def _matmul_kernel(*refs, relu, has_res):
    if has_res:
        a_ref, b_ref, bias_ref, res_ref, o_ref, acc_ref = refs
    else:
        a_ref, b_ref, bias_ref, o_ref, acc_ref = refs
        res_ref = None

    @pl.when(pl.program_id(2) == 0)
    def _():
        acc_ref[...] = jnp.zeros_like(acc_ref)

    acc_ref[...] += jnp.dot(a_ref[...], b_ref[...],
                            preferred_element_type=jnp.float32)

    @pl.when(pl.program_id(2) == pl.num_programs(2) - 1)
    def _():
        r = acc_ref[...] + bias_ref[...]
        if res_ref is not None:
            r = r + res_ref[...]
        if relu:
            r = jnp.maximum(r, 0.0)
        o_ref[...] = r.astype(o_ref.dtype)


def matmul_bias_act(a, b, bias, relu, residual=None):
    """a: (M, K), b: (K, N), bias: (N,) [+ residual (M, N)] -> (M, N) f32."""
    M, K = a.shape
    _, N = b.shape
    tm = min(512, _round_up(M, 8))
    tn = min(512, _round_up(N, 128))
    Kr = _round_up(K, 128)
    if Kr <= 768:
        tk = Kr                                   # single K step, minimal pad
    else:
        nk = -(-Kr // 512)
        tk = _round_up(-(-Kr // nk), 128)
    Mp, Kp, Np = _round_up(M, tm), _round_up(K, tk), _round_up(N, tn)

    ap = jnp.pad(a.astype(jnp.bfloat16), ((0, Mp - M), (0, Kp - K)))
    bp = jnp.pad(b.astype(jnp.bfloat16), ((0, Kp - K), (0, Np - N)))
    biasp = jnp.pad(bias.astype(jnp.float32), (0, Np - N)).reshape(1, Np)

    operands = [ap, bp, biasp]
    in_specs = [
        pl.BlockSpec((tm, tk), lambda i, j, k: (i, k)),
        pl.BlockSpec((tk, tn), lambda i, j, k: (k, j)),
        pl.BlockSpec((1, tn), lambda i, j, k: (0, j)),
    ]
    has_res = residual is not None
    if has_res:
        rp = jnp.pad(residual.astype(jnp.float32), ((0, Mp - M), (0, Np - N)))
        operands.append(rp)
        in_specs.append(pl.BlockSpec((tm, tn), lambda i, j, k: (i, j)))

    cost = pl.CostEstimate(flops=2 * M * K * N, transcendentals=0,
                           bytes_accessed=M * K * 2 + K * N * 2 + M * N * 4)

    out = pl.pallas_call(
        functools.partial(_matmul_kernel, relu=relu, has_res=has_res),
        out_shape=jax.ShapeDtypeStruct((Mp, Np), jnp.float32),
        grid=(Mp // tm, Np // tn, Kp // tk),
        in_specs=in_specs,
        out_specs=pl.BlockSpec((tm, tn), lambda i, j, k: (i, j)),
        scratch_shapes=[pltpu.VMEM((tm, tn), jnp.float32)],
        compiler_params=pltpu.CompilerParams(
            dimension_semantics=("parallel", "parallel", "arbitrary"),
            vmem_limit_bytes=32 * 1024 * 1024),
        cost_estimate=cost,
    )(*operands)
    return out[:M, :N]


def conv2d(x, w, b, stride=1, padding=0, relu=False, residual=None):
    """NHWC conv via im2col + Pallas matmul. x: (N,H,W,Cin); w: (Cout,Cin,kh,kw)."""
    N, H, W, Cin = x.shape
    Cout, _, kh, kw = w.shape
    Ho = (H + 2 * padding - kh) // stride + 1
    Wo = (W + 2 * padding - kw) // stride + 1
    if kh == 1 and kw == 1 and padding == 0:
        a = x[:, ::stride, ::stride, :].reshape(N * Ho * Wo, Cin)
    else:
        # TODO(synk): fuse im2col into the matmul K axis (shifted index_maps
        # over the padded NHWC activation) so the kh*kw-expanded patch matrix
        # is never materialized in HBM.
        xp = jnp.pad(x, ((0, 0), (padding, padding), (padding, padding), (0, 0)))
        cols = [xp[:, ky:ky + (Ho - 1) * stride + 1:stride,
                   kx:kx + (Wo - 1) * stride + 1:stride, :]
                for ky in range(kh) for kx in range(kw)]
        a = jnp.concatenate(cols, axis=-1).reshape(N * Ho * Wo, kh * kw * Cin)
    bm = w.transpose(2, 3, 1, 0).reshape(kh * kw * Cin, Cout)   # (ky,kx,cin) x Cout
    res = None if residual is None else residual.reshape(N * Ho * Wo, Cout)
    out = matmul_bias_act(a, bm, b, relu, residual=res)
    return out.reshape(N, Ho, Wo, Cout)


def maxpool3x3s2(x):
    # pooling glue (not the hot path); 3x3 / stride 2 / pad 1, NHWC
    return jax.lax.reduce_window(
        x, -jnp.inf, jax.lax.max,
        window_dimensions=(1, 3, 3, 1),
        window_strides=(1, 2, 2, 1),
        padding=((0, 0), (1, 1), (1, 1), (0, 0)))


# ----------------------------------------------------------------------------
# Pallas kernel 2: cost volume reductions (L1 diff + counts + set_missing_to_max
#   + confidence + argmin->disparity).  Inputs are pre-warped bf16 features in
#   a lane-dense (..., C, P) layout; the depth axis stays whole in the block
#   because all reductions run over it.  grid = (batch, pixel_tile).
# ----------------------------------------------------------------------------
def _cost_volume_kernel(cur_ref, warped_ref, invd_ref,
                        cost_ref, lowest_ref, conf_ref, *, num_frames):
    D = warped_ref.shape[2]
    Pt = cur_ref.shape[2]

    cur = cur_ref[0].astype(jnp.float32)                      # (C, Pt)

    cost = jnp.zeros((D, Pt), jnp.float32)
    counts = jnp.zeros((D, Pt), jnp.float32)
    for f in range(num_frames):
        w = warped_ref[0, f].astype(jnp.float32)              # (D, C, Pt)
        diffs = jnp.mean(jnp.abs(w - cur[None]), axis=1)      # (D, Pt); masked -> 0
        cost = cost + diffs
        counts = counts + jnp.where(diffs > 0.0, 1.0, 0.0)

    cost = cost * pl.reciprocal(counts + 1e-7, approx=True)   # EUP slot
    missing = jnp.where(cost == 0.0, 1.0, 0.0)
    cost_max = jnp.max(cost, axis=0, keepdims=True)
    cost = cost * (1.0 - missing) + cost_max * missing         # set_missing_to_max

    hits = jnp.where(cost * (1.0 - missing) > 0.0, 1.0, 0.0)
    conf = jnp.where(jnp.sum(hits, axis=0, keepdims=True) == float(D), 1.0, 0.0)

    viz = jnp.where(cost == 0.0, 100.0, cost)
    mins = jnp.min(viz, axis=0, keepdims=True)
    d_iota = jax.lax.broadcasted_iota(jnp.float32, (D, Pt), 0)
    argmin = jnp.min(jnp.where(viz == mins, d_iota, float(D)),
                     axis=0, keepdims=True)                    # first-min index
    onehot = jnp.where(d_iota == argmin, 1.0, 0.0)
    lowest = jnp.sum(onehot * invd_ref[...], axis=0, keepdims=True)   # 1/depth

    cost_ref[0] = cost * conf
    lowest_ref[0] = lowest
    conf_ref[0] = conf


def match_features(current_feats, lookup_feats, poses, K, invK, depth_bins, mh, mw):
    """current_feats: (B, mh, mw, C) NHWC; lookup_feats: (B, F, mh, mw, C)."""
    B = current_feats.shape[0]
    C = current_feats.shape[-1]
    F = lookup_feats.shape[1]
    D = depth_bins.shape[0]
    P = mh * mw
    Wf, Hf = float(mw), float(mh)

    # --- geometry glue (BackprojectDepth + Project3D; tiny einsums, in XLA) ---
    xs1 = jnp.arange(P, dtype=jnp.float32) % mw
    ys1 = jnp.arange(P, dtype=jnp.float32) // mw
    pix = jnp.stack([xs1, ys1, jnp.ones((P,), jnp.float32)], axis=0)        # (3, P)
    cam = jnp.einsum('bij,jp->bip', invK[:, :3, :3], pix)                   # (B, 3, P)
    world = depth_bins[None, :, None, None] * cam[:, None, :, :]            # (B, D, 3, P)
    world = jnp.concatenate([world, jnp.ones((B, D, 1, P), jnp.float32)], axis=2)
    Pm = jnp.einsum('bij,bfjk->bfik', K, poses)[:, :, :3, :]                # (B, F, 3, 4)
    campts = jnp.einsum('bfik,bdkp->bfdip', Pm, world)                      # (B, F, D, 3, P)
    pix2 = campts[:, :, :, :2, :] / (campts[:, :, :, 2:3, :] + 1e-7)
    # align_corners=True: unnormalized sample coordinate == projected pixel coord
    xs = pix2[:, :, :, 0, :]                                                # (B, F, D, P)
    ys = pix2[:, :, :, 1, :]

    # edge mask (grid_sample validity band) * interior mask (current_mask[:,2:-2,2:-2])
    dcol = jnp.arange(P, dtype=jnp.int32) % mw
    drow = jnp.arange(P, dtype=jnp.int32) // mw
    interior = ((dcol >= 2) & (dcol <= mw - 3) & (drow >= 2) & (drow <= mh - 3))
    edge = (xs >= 2.0) & (xs <= Wf - 2.0) & (ys >= 2.0) & (ys <= Hf - 2.0)
    mask = edge & interior[None, None, None, :]                              # (B, F, D, P)

    # --- bilinear warp via direct 4-corner gather + blend (wrapper side; the
    # indices are data-dependent so we let XLA do the gather rather than a
    # one-hot weight matmul).  Masked-out pixels get the current feature so
    # their diff is exactly zero (same as the reference's edge_mask multiply).
    xs_s = jnp.where(mask, xs, 0.0)
    ys_s = jnp.where(mask, ys, 0.0)
    x0 = jnp.floor(xs_s)
    y0 = jnp.floor(ys_s)
    wx = xs_s - x0
    wy = ys_s - y0
    x0i = jnp.clip(x0, 0.0, Wf - 1.0).astype(jnp.int32)
    x1i = jnp.clip(x0 + 1.0, 0.0, Wf - 1.0).astype(jnp.int32)
    y0i = jnp.clip(y0, 0.0, Hf - 1.0).astype(jnp.int32)
    y1i = jnp.clip(y0 + 1.0, 0.0, Hf - 1.0).astype(jnp.int32)

    lut = lookup_feats.reshape(B, F, P, C).astype(jnp.bfloat16)

    def gather_one(feat_pc, idx_dp):                   # (P, C), (D, P) -> (D, P, C)
        g = jnp.take(feat_pc, idx_dp.reshape(-1), axis=0, mode='clip')
        return g.reshape(D, P, C).astype(jnp.float32)

    gather = jax.vmap(jax.vmap(gather_one))            # over (B, F)
    g00 = gather(lut, y0i * mw + x0i)
    g01 = gather(lut, y0i * mw + x1i)
    g10 = gather(lut, y1i * mw + x0i)
    g11 = gather(lut, y1i * mw + x1i)
    wx = wx[..., None]
    wy = wy[..., None]
    warped = ((1.0 - wy) * (1.0 - wx) * g00 + (1.0 - wy) * wx * g01 +
              wy * (1.0 - wx) * g10 + wy * wx * g11)   # (B, F, D, P, C) f32

    cur = current_feats.reshape(B, P, C)
    warped = jnp.where(mask[..., None], warped, cur[:, None, None])
    warped = warped.astype(jnp.bfloat16)

    # lane-dense kernel layout: channels second-minor, pixels (128-tiled) on lanes
    warped_t = jnp.transpose(warped, (0, 1, 2, 4, 3))            # (B, F, D, C, P)
    cur_t = jnp.transpose(cur, (0, 2, 1)).astype(jnp.bfloat16)   # (B, C, P)

    Pp = _round_up(P, 128)
    p_tile = 128
    if Pp != P:
        warped_t = jnp.pad(warped_t, ((0, 0), (0, 0), (0, 0), (0, 0), (0, Pp - P)))
        cur_t = jnp.pad(cur_t, ((0, 0), (0, 0), (0, Pp - P)))

    inv_d = (1.0 / depth_bins).reshape(D, 1)

    kern = functools.partial(_cost_volume_kernel, num_frames=F)
    cost, lowest, conf = pl.pallas_call(
        kern,
        out_shape=(jax.ShapeDtypeStruct((B, D, Pp), jnp.float32),
                   jax.ShapeDtypeStruct((B, 1, Pp), jnp.float32),
                   jax.ShapeDtypeStruct((B, 1, Pp), jnp.float32)),
        grid=(B, Pp // p_tile),
        in_specs=[
            pl.BlockSpec((1, C, p_tile), lambda b, p: (b, 0, p)),
            pl.BlockSpec((1, F, D, C, p_tile), lambda b, p: (b, 0, 0, 0, p)),
            pl.BlockSpec((D, 1), lambda b, p: (0, 0)),
        ],
        out_specs=(pl.BlockSpec((1, D, p_tile), lambda b, p: (b, 0, p)),
                   pl.BlockSpec((1, 1, p_tile), lambda b, p: (b, 0, p)),
                   pl.BlockSpec((1, 1, p_tile), lambda b, p: (b, 0, p))),
        compiler_params=pltpu.CompilerParams(
            dimension_semantics=("parallel", "parallel"),
            vmem_limit_bytes=32 * 1024 * 1024),
    )(cur_t, warped_t, inv_d)

    cost = cost[:, :, :P]
    lowest = lowest[:, :, :P].reshape(B, mh, mw)
    conf = conf[:, :, :P].reshape(B, mh, mw)
    return cost, lowest, conf


# ----------------------------------------------------------------------------
# Parameters (synthetic, deterministic) — ResNet-18 stem/blocks + reduce_conv
# ----------------------------------------------------------------------------
def _fold_bn(w, gamma, beta, mean, var, eps=1e-5):
    scale = gamma / jnp.sqrt(var + eps)
    return w * scale[:, None, None, None], beta - mean * scale


def _conv_bn(key, cout, cin, k):
    k1, k2, k3, k4, k5 = jax.random.split(key, 5)
    w = jax.random.normal(k1, (cout, cin, k, k), jnp.float32) * (2.0 / (cin * k * k)) ** 0.5
    gamma = 1.0 + 0.1 * jax.random.normal(k2, (cout,), jnp.float32)
    beta = 0.1 * jax.random.normal(k3, (cout,), jnp.float32)
    mean = 0.05 * jax.random.normal(k4, (cout,), jnp.float32)
    var = 1.0 + 0.1 * jnp.abs(jax.random.normal(k5, (cout,), jnp.float32))
    return _fold_bn(w, gamma, beta, mean, var)


def _basic_block(key, cin, cout, stride):
    ks = jax.random.split(key, 3)
    p = {'stride': stride}
    p['w1'], p['b1'] = _conv_bn(ks[0], cout, cin, 3)
    p['w2'], p['b2'] = _conv_bn(ks[1], cout, cout, 3)
    if stride != 1 or cin != cout:
        p['wd'], p['bd'] = _conv_bn(ks[2], cout, cin, 1)
    return p


def init_params(seed, num_depth_bins):
    keys = jax.random.split(jax.random.PRNGKey(seed), 12)
    p = {}
    p['conv1_w'], p['conv1_b'] = _conv_bn(keys[0], 64, 3, 7)
    p['layer1'] = [_basic_block(keys[1], 64, 64, 1), _basic_block(keys[2], 64, 64, 1)]
    p['layer2'] = [_basic_block(keys[3], 64, 128, 2), _basic_block(keys[4], 128, 128, 1)]
    p['layer3'] = [_basic_block(keys[5], 128, 256, 2), _basic_block(keys[6], 256, 256, 1)]
    p['layer4'] = [_basic_block(keys[7], 256, 512, 2), _basic_block(keys[8], 512, 512, 1)]
    kr1, kr2 = jax.random.split(keys[9])
    cin = 64 + num_depth_bins
    p['reduce_w'] = jax.random.normal(kr1, (64, cin, 3, 3), jnp.float32) * (2.0 / (cin * 9)) ** 0.5
    p['reduce_b'] = 0.01 * jax.random.normal(kr2, (64,), jnp.float32)
    return p


def basic_block(x, p):
    out1 = conv2d(x, p['w1'], p['b1'], stride=p['stride'], padding=1, relu=True)
    if 'wd' in p:
        identity = conv2d(x, p['wd'], p['bd'], stride=p['stride'], padding=0, relu=False)
    else:
        identity = x
    # residual add + final ReLU fused into the second conv's matmul epilogue
    return conv2d(out1, p['w2'], p['b2'], stride=1, padding=1, relu=True,
                  residual=identity)


# ----------------------------------------------------------------------------
# Forward pass (mirrors ResnetEncoderMatching.forward); internals are NHWC,
# public interface stays NCHW.
# ----------------------------------------------------------------------------
def resnet_encoder_matching_forward(params, current_image, lookup_images,
                                    poses, K, invK, depth_bins):
    def feature_extraction(image_nchw):
        image = jnp.transpose(image_nchw, (0, 2, 3, 1))       # NCHW -> NHWC once
        image = (image - 0.45) / 0.225
        f0 = conv2d(image, params['conv1_w'], params['conv1_b'],
                    stride=2, padding=3, relu=True)           # layer0
        x = maxpool3x3s2(f0)
        for blk in params['layer1']:
            x = basic_block(x, blk)                           # layer1
        return f0, x

    f0, f1 = feature_extraction(current_image)
    feats_nhwc = [f0, f1]

    B, Fr, ch, H, W = lookup_images.shape
    _, lf = feature_extraction(lookup_images.reshape(B * Fr, ch, H, W))
    mh, mw, C1 = lf.shape[1], lf.shape[2], lf.shape[3]
    lookup_feats = lf.reshape(B, Fr, mh, mw, C1)

    cost_volume, lowest_cost, confidence_mask = match_features(
        f1, lookup_feats, poses, K, invK, depth_bins, mh, mw)  # cost: (B, D, P)

    cost_nhwc = cost_volume.transpose(0, 2, 1).reshape(B, mh, mw, -1)
    post = conv2d(jnp.concatenate([feats_nhwc[-1], cost_nhwc], axis=-1),
                  params['reduce_w'], params['reduce_b'],
                  stride=1, padding=1, relu=True)              # reduce_conv

    x = post
    for blk in params['layer2']:
        x = basic_block(x, blk)
    feats_nhwc.append(x)
    for blk in params['layer3']:
        x = basic_block(x, blk)
    feats_nhwc.append(x)
    for blk in params['layer4']:
        x = basic_block(x, blk)
    feats_nhwc.append(x)

    features = [jnp.transpose(f, (0, 3, 1, 2)) for f in feats_nhwc]  # back to NCHW
    return features, lowest_cost, confidence_mask


# ----------------------------------------------------------------------------
if __name__ == "__main__":
    B, Fr = 2, 2
    H, W = 64, 64
    D = 16                      # num_depth_bins (constructor arg; default 96)
    min_d, max_d = 0.1, 20.0
    mh, mw = H // 4, W // 4

    key = jax.random.PRNGKey(0)
    k1, k2, k3 = jax.random.split(key, 3)
    current_image = jax.random.uniform(k1, (B, 3, H, W), jnp.float32)
    lookup_images = jax.random.uniform(k2, (B, Fr, 3, H, W), jnp.float32)

    # intrinsics at matching resolution (and analytic inverse)
    fx = fy = 0.9 * mw
    cx, cy = (mw - 1) / 2.0, (mh - 1) / 2.0
    K1 = jnp.array([[fx, 0., cx, 0.],
                    [0., fy, cy, 0.],
                    [0., 0., 1., 0.],
                    [0., 0., 0., 1.]], jnp.float32)
    invK1 = jnp.array([[1. / fx, 0., -cx / fx, 0.],
                       [0., 1. / fy, -cy / fy, 0.],
                       [0., 0., 1., 0.],
                       [0., 0., 0., 1.]], jnp.float32)
    K = jnp.broadcast_to(K1, (B, 4, 4))
    invK = jnp.broadcast_to(invK1, (B, 4, 4))

    # relative poses: identity rotation + small translations; one all-zero pose
    poses = jnp.broadcast_to(jnp.eye(4, dtype=jnp.float32), (B, Fr, 4, 4))
    t = 0.05 * jax.random.normal(k3, (B, Fr, 3), jnp.float32)
    poses = poses.at[:, :, :3, 3].set(t)
    poses = poses.at[0, 1].set(jnp.zeros((4, 4), jnp.float32))   # "missing" frame

    params = init_params(0, D)
    depth_bins = jnp.linspace(min_d, max_d, D).astype(jnp.float32)

    features, lowest_cost, confidence_mask = resnet_encoder_matching_forward(
        params, current_image, lookup_images, poses, K, invK, depth_bins)

    for f in features:
        jax.block_until_ready(f)
    jax.block_until_ready(lowest_cost)
    jax.block_until_ready(confidence_mask)
    print("KERNEL_OK")
</pallas_src>

<mosaic_0001>
module attributes {stable_mosaic.version = 11 : i64} {
  func.func @_matmul_kernel(%arg0: i32, %arg1: i32, %arg2: i32, %arg3: memref<512x256xbf16, #tpu.memory_space<vmem>>, %arg4: memref<256x128xbf16, #tpu.memory_space<vmem>>, %arg5: memref<1x128xf32, #tpu.memory_space<vmem>>, %arg6: memref<512x128xf32, #tpu.memory_space<vmem>>, %arg7: memref<512x128xf32, #tpu.memory_space<vmem>>) attributes {dimension_semantics = [#tpu.dimension_semantics<parallel>, #tpu.dimension_semantics<parallel>, #tpu.dimension_semantics<arbitrary>], iteration_bounds = array<i64: 4, 1, 1>, scalar_prefetch = 0 : i64, scratch_operands = 1 : i64, tpu.core_type = #tpu.core_type<tc>, window_params = [{transform_indices = @transform_0, window_bounds = array<i64: 512, 256>}, {transform_indices = @transform_1, window_bounds = array<i64: 256, 128>}, {transform_indices = @transform_2, window_bounds = array<i64: 1, 128>}, {transform_indices = @transform_3, window_bounds = array<i64: 512, 128>}]} {
    %c0_i32 = arith.constant 0 : i32
    %0 = arith.cmpi eq, %arg2, %c0_i32 : i32
    %1 = arith.extui %0 : i1 to i32
    %c0_i32_0 = arith.constant 0 : i32
    %2 = arith.cmpi ne, %1, %c0_i32_0 : i32
    scf.if %2 {
      %cst_10 = arith.constant 0.000000e+00 : f32
      %12 = vector.broadcast %cst_10 : f32 to vector<512x128xf32>
      %c0_11 = arith.constant 0 : index
      %c0_12 = arith.constant 0 : index
      %13 = vector.load %arg7[%c0_11, %c0_12] : memref<512x128xf32, #tpu.memory_space<vmem>>, vector<512x128xf32>
      tpu.vector_store %arg7[%c0_11, %c0_12], %12 {strides = array<i32>} : memref<512x128xf32, #tpu.memory_space<vmem>>, vector<512x128xf32>,
    } else {
    }
    %c0 = arith.constant 0 : index
    %c0_1 = arith.constant 0 : index
    %3 = vector.load %arg7[%c0, %c0_1] : memref<512x128xf32, #tpu.memory_space<vmem>>, vector<512x128xf32>
    %c0_2 = arith.constant 0 : index
    %c0_3 = arith.constant 0 : index
    %4 = vector.load %arg3[%c0_2, %c0_3] : memref<512x256xbf16, #tpu.memory_space<vmem>>, vector<512x256xbf16>
    %c0_4 = arith.constant 0 : index
    %c0_5 = arith.constant 0 : index
    %5 = vector.load %arg4[%c0_4, %c0_5] : memref<256x128xbf16, #tpu.memory_space<vmem>>, vector<256x128xbf16>
    %cst = arith.constant dense<0.000000e+00> : vector<512x128xf32>
    %6 = tpu.matmul %4, %5, %cst {dimension_numbers = #tpu.dot_dimension_numbers<[1], [0], [0], [1], [0, 0, 1, 1], [], []>} : vector<512x256xbf16>, vector<256x128xbf16>, vector<512x128xf32> -> vector<512x128xf32>
    %7 = arith.addf %3, %6 : vector<512x128xf32>
    %c0_6 = arith.constant 0 : index
    %c0_7 = arith.constant 0 : index
    %8 = vector.load %arg7[%c0_6, %c0_7] : memref<512x128xf32, #tpu.memory_space<vmem>>, vector<512x128xf32>
    tpu.vector_store %arg7[%c0_6, %c0_7], %7 {strides = array<i32>} : memref<512x128xf32, #tpu.memory_space<vmem>>, vector<512x128xf32>,
    %c0_i32_8 = arith.constant 0 : i32
    %9 = arith.cmpi eq, %arg2, %c0_i32_8 : i32
    %10 = arith.extui %9 : i1 to i32
    %c0_i32_9 = arith.constant 0 : i32
    %11 = arith.cmpi ne, %10, %c0_i32_9 : i32
    scf.if %11 {
      %c0_10 = arith.constant 0 : index
      %c0_11 = arith.constant 0 : index
      %12 = vector.load %arg7[%c0_10, %c0_11] : memref<512x128xf32, #tpu.memory_space<vmem>>, vector<512x128xf32>
      %c0_12 = arith.constant 0 : index
      %c0_13 = arith.constant 0 : index
      %13 = vector.load %arg5[%c0_12, %c0_13] : memref<1x128xf32, #tpu.memory_space<vmem>>, vector<1x128xf32>
      %14 = vector.broadcast %13 : vector<1x128xf32> to vector<512x128xf32>
      %15 = arith.addf %12, %14 : vector<512x128xf32>
      %cst_14 = arith.constant 0.000000e+00 : f32
      %16 = vector.broadcast %cst_14 : f32 to vector<512x128xf32>
      %17 = arith.maximumf %15, %16 : vector<512x128xf32>
      %c0_15 = arith.constant 0 : index
      %c0_16 = arith.constant 0 : index
      %18 = vector.load %arg6[%c0_15, %c0_16] : memref<512x128xf32, #tpu.memory_space<vmem>>, vector<512x128xf32>
      tpu.vector_store %arg6[%c0_15, %c0_16], %17 {strides = array<i32>} : memref<512x128xf32, #tpu.memory_space<vmem>>, vector<512x128xf32>,
    } else {
    }
    return
  }
  func.func @transform_0(%arg0: i32, %arg1: i32, %arg2: i32) -> (i32, i32) {
    %c0_i32 = arith.constant 0 : i32
    return %arg0, %arg2 : i32, i32
  }
  func.func @transform_1(%arg0: i32, %arg1: i32, %arg2: i32) -> (i32, i32) {
    %c0_i32 = arith.constant 0 : i32
    return %arg2, %arg1 : i32, i32
  }
  func.func @transform_2(%arg0: i32, %arg1: i32, %arg2: i32) -> (i32, i32) {
    %c0_i32 = arith.constant 0 : i32
    %c0_i32_0 = arith.constant 0 : i32
    return %c0_i32, %arg1 : i32, i32
  }
  func.func @transform_3(%arg0: i32, %arg1: i32, %arg2: i32) -> (i32, i32) {
    %c0_i32 = arith.constant 0 : i32
    return %arg0, %arg1 : i32, i32
  }
}

</mosaic_0001>

<bundles_post_ra>
// kernel: tpu_custom_call.1
= control target key start
LH: loop header
LB: loop body
LE: loop exit
PB: predicated region body
PF: predicated region fallthrough
CT: control target
= control target key end

     0   :  { %8 = vsyncpa [#allocation4], 0  ;;  %s2675_s0 = inlined_call_operand.hbm [shape: bf16[2048,256], index: 0, kind: input, shape index: {}]   ;;  %s2676_s1 = inlined_call_operand.hbm [shape: bf16[256,128], index: 1, kind: input, shape index: {}]   ;;  %s2677_s2 = inlined_call_operand.vmem [shape: f32[1,128], index: 2, kind: input, shape index: {}]   ;;  %s2678_s3 = inlined_call_operand.hbm [shape: f32[2048,128], index: 3, kind: output, shape index: {}]  }
   0x1   :  { %10 = vsyncpa [#allocation4 + $0x1], 0 }
   0x2   :  { %11 = vsyncpa [#allocation7], 0 }
   0x3   :  { %12 = vsyncpa [#allocation5], 0 }
   0x4   :  { %14 = vsyncpa [#allocation5 + $0x1], 0  ;;  %s2220_s12 = smov 0   ;;  %s2222_s13 = smov 0  }
   0x5   :  { %s2224_s14 = smov 0   ;;  %s2226_s15 = smov 0  }
   0x6   :  { %s2228_s16 = smov 0   ;;  %s2230_s17 = smov 0  }
   0x7 LB: > { %s1717_s18 = sadd.s32 4294967295, %s2188_s17   ;;  %s1718_s19 = sadd.s32 4294967294, %s2188_s17   ;;  %s2188_s17 = sphi %s2230_s17, %s20_s17   ;;  %s2184_s16 = sphi %s2228_s16, %s2701_s16   ;;  %s2180_s15 = sphi %s2226_s15, %s2700_s15   ;;  %s2176_s14 = sphi %s2224_s14, %s2699_s14   ;;  %s2172_s13 = sphi %s2222_s13, %s2698_s13   ;;  %s2168_s12 = sphi %s2220_s12, %s2697_s12  }
   0x8   : > { %p61_p0 = scmp.ne.s32.totalorder %s2172_s13, %s2168_s12  ;;  %p2254_p1 = scmp.eq.s32.totalorder %s1717_s18, 0 }
   0x9   : > { %p2258_p2 = scmp.eq.s32.totalorder %s1717_s18, 3  ;;  %p147_p3 = scmp.eq.s32.totalorder %s1718_s19, 3 }
   0xa   : > { %s2683_s20 = scalar_select %p2254_p1, 1, 0 }
   0xb   : > { %s2684_s21 = scalar_select %p2258_p2, 1, 0 }
   0xc   : > { %p2264_p4 = por %p2254_p1, %p61_p0  ;;  %p1719_p5 = scmp.ge.s32.totalorder %s2188_s17, 1 }
   0xd   : > { %p2269_p6 = por %p147_p3, %p61_p0  ;;  %p154_p7 = scmp.lt.s32.totalorder %s2188_s17, 5 }
   0xe   : > { %s2685_s22 = scalar_select %p2264_p4, 1, 0 }
   0xf   : > { %s2686_s23 = scalar_select %p2269_p6, 1, 0 }
  0x10   : > { %p2274_p8 = pnand %p1719_p5, %p154_p7  ;;  %s2190_s25 = smov [#allocation6]  }
  0x11   : > { %s170_s26 = sshll.u32 %s2190_s25, 4  ;;  %s39_s28 = sadd.s32 1, %s2184_s16  ;;  %s171_s26 = int_to_ptr.vmem [resolvable:$true] %s170_s26 }
  0x12   : > { %s2687_s24 = scalar_select %p2274_p8, 1, 0 }
  0x13   : > { %p1860_p9 = pneg %p2274_p8  ;;  %s2044_s4 = scalar_lea.hbm %s2676_s1, 2048 }
  0x14   : > { %p2045_p11 = scmp.ne.s32.totalorder %s2676_s1, %s2044_s4  ;;  %p2051_p3 = scmp.lt.u32.totalorder %s2044_s4, %s2676_s1 }
  0x15   : > { %p2282_p10 = pnand %p1860_p9, %p2254_p1 }
  0x17   : > { %p2046_p12 = pneg %p2282_p10 }
  0x19   : > { %p2047_p13 = pnand %p2046_p12, %p2045_p11 }
  0x1b   : > { %p2048_p0 = pneg %p2047_p13 }
  0x1d   : > { %p2053_p5 = pnand %p2051_p3, %p2048_p0 }
  0x1f   : > { %2056 = shalt.err (!%p2053_p5)
}
  0x20   : > { %s2057_s9 = scalar_lea.vmem %s171_s26, 2048  ;;  %p2065_p1 = scmp.lt.s32.totalorder %s171_s26, %s171_s26 }
  0x21   : > { %p2058_p7 = scmp.ne.s32.totalorder %s171_s26, %s2057_s9  ;;  %p2066_p4 = scmp.lt.s32.totalorder %s2057_s9, %s2057_s9 }
  0x23   : > { %p2060_p9 = pnand %p2058_p7, %p2046_p12  ;;  %p2067_p8 = por %p2066_p4, %p2065_p1 }
  0x25   : > { %p2061_p6 = pneg %p2060_p9 }
  0x27   : > { %p2068_p2 = pnand %p2067_p8, %p2061_p6 }
  0x29   : > { %2071 = shalt.err (!%p2068_p2)
}
  0x2a   : > { %s2191_s10 = smov 64   ;;  %s2192_s11 = smov 4  }
  0x2b   : > { %1863 = dma.hbm_to_vmem [thread:$0]  (!%p2282_p10), %s2676_s1, 2048, %s171_s26, [#allocation7], %s2191_s10, %s2191_s10, %s2192_s11  }
  0x2c   : > { %p41_p1 = scmp.ge.s32.totalorder %s39_s28, 4  ;;  %s48_s25 = sadd.s32 1, %s2176_s14 }
  0x2d   : > { %p55_p2 = scmp.ne.s32.totalorder %s2176_s14, %s2172_s13  ;;  %p56_p4 = scmp.eq.s32.totalorder %s2188_s17, 0 }
  0x2e   : > { %s2703_s28 = smov (%p41_p1, %s39_s28), 0  ;;  %p2690_p8 = scmp.ne.s32.totalorder %s2684_s21, 0 }
  0x2f   : > { %p2309_p6 = por %p56_p4, %p55_p2  ;;  %s43_s27 = ssub.s32 %s2184_s16, %s2703_s28 }
  0x30   : > { %p2315_p11 = por %p2690_p8, %p55_p2  ;;  %p1873_p12 = scmp.lt.s32.totalorder %s2188_s17, 4 }
  0x31   : > { %p46_p10 = scmp.eq.s32.totalorder %s43_s27, 0  ;;  %s190_s26 = sand.u32 1, %s2176_s14  }
  0x32   : > { %s1723_s4 = sshll.u32 %s190_s26, 9  ;;  %s1818_s6 = sshll.u32 %s2184_s16, 13 }
  0x33   : > { %s2324_s5 = scalar_select %p46_p10, %s2176_s14, %s48_s25  }
  0x34   : > { %s2330_s9 = scalar_lea.hbm %s2675_s0, %s1818_s6  ;;  %s194_s21 = scalar_lea.vmem [#allocation3], %s1723_s4 }
  0x35   : > { %s204_s10 = sshll.u32 %s194_s21, 4  ;;  %p2336_p13 = pnand %p1873_p12, %p2309_p6  ;;  %s2332_s10 = int_to_ptr.vmem [resolvable:$true] %s204_s10 }
  0x36   : > { %s2340_s18 = scalar_lea.sflag [#allocation4], %s190_s26  ;;  %s2072_s19 = scalar_lea.hbm %s2330_s9, 8192 }
  0x37   : > { %p2073_p0 = scmp.ne.s32.totalorder %s2330_s9, %s2072_s19  ;;  %p2074_p3 = pneg %p2336_p13 }
  0x38   : > { %s2077_s29 = scalar_lea.hbm %s2675_s0, 32768  ;;  %p2078_p9 = scmp.lt.u32.totalorder %s2330_s9, %s2675_s0 }
  0x39   : > { %p2075_p5 = pnand %p2074_p3, %p2073_p0  ;;  %p2079_p1 = scmp.lt.u32.totalorder %s2077_s29, %s2072_s19 }
  0x3a   : > { %p2081_p4 = scmp.lt.u32.totalorder %s2072_s19, %s2330_s9 }
  0x3b   : > { %p2076_p7 = pneg %p2075_p5  ;;  %p2080_p2 = por %p2079_p1, %p2078_p9 }
  0x3d   : > { %p2082_p6 = por %p2081_p4, %p2080_p2 }
  0x3f   : > { %p2083_p8 = pnand %p2082_p6, %p2076_p7 }
  0x41   : > { %2086 = shalt.err (!%p2083_p8)
}
  0x42   : > { %s2087_s26 = scalar_lea.vmem %s2332_s10, 8192  ;;  %s2193_s7 = smov [#allocation3]  }
  0x43   : > { %p2088_p12 = scmp.ne.s32.totalorder %s2332_s10, %s2087_s26  ;;  %s2092_s8 = sshll.u32 %s2193_s7, 4  ;;  %s2093_s8 = int_to_ptr.vmem [resolvable:$false] %s2092_s8 }
  0x44   : > { %s2094_s21 = scalar_lea.vmem %s2093_s8, 16384  ;;  %p2095_p5 = scmp.lt.s32.totalorder %s2332_s10, %s2093_s8 }
  0x45   : > { %p2090_p10 = pnand %p2088_p12, %p2074_p3  ;;  %p2096_p9 = scmp.lt.s32.totalorder %s2094_s21, %s2087_s26 }
  0x47   : > { %p2091_p0 = pneg %p2090_p10  ;;  %p2097_p1 = por %p2096_p9, %p2095_p5 }
  0x49   : > { %p2098_p2 = pnand %p2097_p1, %p2091_p0 }
  0x4b   : > { %2101 = shalt.err (!%p2098_p2)
}
  0x4c   : > { %s2194_s19 = smov 128   ;;  %s2195_s25 = smov 8  }
  0x4d   : > { %1867 = dma.hbm_to_vmem [thread:$0]  (!%p2336_p13), %s2330_s9, 8192, %s2332_s10, %s2340_s18, %s2194_s19, %s2194_s19, %s2195_s25  }
  0x4e   : > { %p2693_p3 = scmp.ne.s32.totalorder %s2687_s24, 0 }
  0x4f   : > { %s2371_s27 = sand.u32 (!%p2693_p3), 1, %s2172_s13   ;;  %p2694_p7 = scmp.ne.s32.totalorder (!%p2693_p3), %s2685_s22, 0 }
  0x50   : > { %216 = sbr.rel (%p2693_p3) target bundleno = 509 (0x1fd), region = 32  ;;  %s1728_s29 = sshll.u32 (!%p2693_p3), %s2371_s27, 9 }
  0x51   : > { %s219_s4 = scalar_lea.sflag (!%p2693_p3), [#allocation4], %s2371_s27  ;;  %s2377_s6 = scalar_lea.vmem (!%p2693_p3), [#allocation3], %s1728_s29 }
  0x57   : > { %2155 = dma.done.wait (%p2694_p7), %s219_s4, 8192  }
  0x58   : > { %2157 = vsyncadd (%p2694_p7), %s219_s4, 4294959104  ;;  %p2695_p13 = scmp.ne.s32.totalorder %s2683_s20, 0 }
  0x5a   : > { %2159 = dma.done.wait (%p2695_p13), [#allocation7], 2048  }
  0x5b   : > { %2161 = vsyncadd (%p2695_p13), [#allocation7], 4294965248  ;;  %v2196_v0 = vmov 0   ;;  %v1932_v1 = vld [vmem:[#allocation6] sm:$0xff]   ;;  %v1933_v2 = vld [vmem:[#allocation6 + $0x8] sm:$0xff]   ;;  %s2494_s24 = scalar_lea.vmem [#allocation8], %s1728_s29 }
  0x5c   : > { %904 = vmatprep.subr.bf16.mxu0 %v2196_v0  ;;  %1820 = vmatprep.subr.bf16.mxu1 %v2196_v0  ;;  %v1934_v3 = vld [vmem:[#allocation6 + $0x10] sm:$0xff]   ;;  %v1935_v4 = vld [vmem:[#allocation6 + $0x18] sm:$0xff]   ;;  %v1936_v5 = vld [vmem:[#allocation6 + $0x20] sm:$0xff]   ;;  %s1819_s9 = sshll.u32 %s2180_s15, 13  ;;  %s1602_s10 = sshll.u32 %s2494_s24, 4  ;;  %s2623_s10 = int_to_ptr.vmem [resolvable:$true] %s1602_s10 }
  0x5d   : > { %905 = vmatpush1.bf16.msra.mxu0 %v1932_v1  ;;  %1836 = vmatpush1.bf16.msra.mxu1 %v1932_v1  ;;  %v1950_v6 = vld [vmem:[%s2377_s6 + $0x4] ss:$8 sps:$4 sm:$0xff]   ;;  %v1938_v9 = vld [vmem:[#allocation6 + $0x30] sm:$0xff]   ;;  %v1939_v10 = vld [vmem:[#allocation6 + $0x38] sm:$0xff]   ;;  %s2621_s26 = scalar_lea.hbm %s2678_s3, %s1819_s9  ;;  %s1588_s15 = scalar_lea.sflag [#allocation5], %s2371_s27 }
  0x5e   : > { %906 = vmatprep.subr.bf16.mxu0 %v2196_v0  ;;  %1821 = vmatprep.subr.bf16.mxu1 %v2196_v0  ;;  %v1937_v7 = vld [vmem:[#allocation6 + $0x28] sm:$0xff]   ;;  %v1940_v11 = vld [vmem:[#allocation6 + $0x40] sm:$0xff]   ;;  %v1942_v13 = vld [vmem:[#allocation6 + $0x50] sm:$0xff]   ;;  %s2102_s7 = scalar_lea.vmem %s2623_s10, 8192  ;;  %s2197_s8 = smov [#allocation8]  }
  0x5f   : > { %v1953_v8 = vld [vmem:[%s2377_s6 + $0x104] ss:$8 sps:$4 sm:$0xff]   ;;  %936 = vmatprep.mubr.bf16.mxu0 %v1950_v6  ;;  %v1943_v14 = vld [vmem:[#allocation6 + $0x58] sm:$0xff]   ;;  %v1946_v17 = vld [vmem:[#allocation6 + $0x70] sm:$0xff]   ;;  %p2103_p4 = scmp.ne.s32.totalorder %s2623_s10, %s2102_s7  ;;  %s2106_s21 = sshll.u32 %s2197_s8, 4  ;;  %s2107_s21 = int_to_ptr.vmem [resolvable:$false] %s2106_s21 }
  0x60   : > { %1064 = vmatprep.mubr.bf16.mxu1 %v1953_v8  ;;  %v1941_v12 = vld [vmem:[#allocation6 + $0x48] sm:$0xff]   ;;  %v1944_v15 = vld [vmem:[#allocation6 + $0x60] sm:$0xff]   ;;  %v1947_v18 = vld [vmem:[#allocation6 + $0x78] sm:$0xff]   ;;  %s2108_s19 = scalar_lea.vmem %s2107_s21, 16384  ;;  %p2109_p12 = scmp.lt.s32.totalorder %s2623_s10, %s2107_s21 }
  0x61   : > { %907 = vmatpush1.bf16.msra.mxu0 %v1933_v2  ;;  %1837 = vmatpush1.bf16.msra.mxu1 %v1933_v2  ;;  %v1945_v16 = vld [vmem:[#allocation6 + $0x68] sm:$0xff]   ;;  %v1954_v21 = vld [vmem:[%s2377_s6 + $0x14] ss:$8 sps:$4 sm:$0xff]   ;;  %v1958_v23 = vld [vmem:[%s2377_s6 + $0x10] ss:$8 sps:$4 sm:$0xff]   ;;  %p2104_p6 = pnand %p2103_p4, %p2315_p11  ;;  %p2110_p10 = scmp.lt.s32.totalorder %s2108_s19, %s2102_s7 }
  0x62   : > { %908 = vmatprep.subr.bf16.mxu0 %v2196_v0  ;;  %1822 = vmatprep.subr.bf16.mxu1 %v2196_v0  ;;  %v1948_v19 = vld [vmem:[%s2377_s6] ss:$8 sps:$4 sm:$0xff]   ;;  %v1956_v22 = vld [vmem:[%s2377_s6 + $0x114] ss:$8 sps:$4 sm:$0xff]   ;;  %v1959_v24 = vld [vmem:[%s2377_s6 + $0x110] ss:$8 sps:$4 sm:$0xff]  }
  0x63   : > { %v1951_v20 = vld [vmem:[%s2377_s6 + $0x100] ss:$8 sps:$4 sm:$0xff]   ;;  %v1960_v25 = vld [vmem:[%s2377_s6 + $0x24] ss:$8 sps:$4 sm:$0xff]   ;;  %v1966_v29 = vld [vmem:[%s2377_s6 + $0x34] ss:$8 sps:$4 sm:$0xff]   ;;  %p2105_p8 = pneg %p2104_p6  ;;  %p2111_p0 = por %p2110_p10, %p2109_p12 }
  0x64   : > { %v1962_v26 = vld [vmem:[%s2377_s6 + $0x124] ss:$8 sps:$4 sm:$0xff]   ;;  %v1964_v27 = vld [vmem:[%s2377_s6 + $0x20] ss:$8 sps:$4 sm:$0xff]   ;;  %v1968_v30 = vld [vmem:[%s2377_s6 + $0x134] ss:$8 sps:$4 sm:$0xff]  }
  0x65   : > { %909 = vmatpush1.bf16.msra.mxu0 %v1934_v3  ;;  %1838 = vmatpush1.bf16.msra.mxu1 %v1934_v3  ;;  %v1965_v28 = vld [vmem:[%s2377_s6 + $0x120] ss:$8 sps:$4 sm:$0xff]   ;;  %v1970_v31 = vld [vmem:[%s2377_s6 + $0x30] ss:$8 sps:$4 sm:$0xff]   ;;  %v1972_v33 = vld [vmem:[%s2377_s6 + $0x44] ss:$8 sps:$4 sm:$0xff]   ;;  %p2112_p5 = pnand %p2111_p0, %p2105_p8 }
  0x66   : > { %910 = vmatprep.subr.bf16.mxu0 %v2196_v0  ;;  %1823 = vmatprep.subr.bf16.mxu1 %v2196_v0  ;;  %v1971_v32 = vld [vmem:[%s2377_s6 + $0x130] ss:$8 sps:$4 sm:$0xff]   ;;  %v1974_v34 = vld [vmem:[%s2377_s6 + $0x144] ss:$8 sps:$4 sm:$0xff]   ;;  %v1976_v35 = vld [vmem:[%s2377_s6 + $0x40] ss:$8 sps:$4 sm:$0xff]  }
  0x67   : > { %v1977_v36 = vld [vmem:[%s2377_s6 + $0x140] ss:$8 sps:$4 sm:$0xff]   ;;  %v1978_v37 = vld [vmem:[%s2377_s6 + $0x54] ss:$8 sps:$4 sm:$0xff]   ;;  %v1982_v39 = vld [vmem:[%s2377_s6 + $0x50] ss:$8 sps:$4 sm:$0xff]  }
  0x68   : > { %v1980_v38 = vld [vmem:[%s2377_s6 + $0x154] ss:$8 sps:$4 sm:$0xff]   ;;  %v1983_v40 = vld [vmem:[%s2377_s6 + $0x150] ss:$8 sps:$4 sm:$0xff]   ;;  %v1984_v41 = vld [vmem:[%s2377_s6 + $0x64] ss:$8 sps:$4 sm:$0xff]  }
  0x69   : > { %911 = vmatpush1.bf16.msra.mxu0 %v1935_v4  ;;  %1839 = vmatpush1.bf16.msra.mxu1 %v1935_v4  ;;  %v1986_v42 = vld [vmem:[%s2377_s6 + $0x164] ss:$8 sps:$4 sm:$0xff]   ;;  %v1988_v43 = vld [vmem:[%s2377_s6 + $0x60] ss:$8 sps:$4 sm:$0xff]   ;;  %v1990_v45 = vld [vmem:[%s2377_s6 + $0x74] ss:$8 sps:$4 sm:$0xff]  }
  0x6a   : > { %912 = vmatprep.subr.bf16.mxu0 %v2196_v0  ;;  %1824 = vmatprep.subr.bf16.mxu1 %v2196_v0  ;;  %v1989_v44 = vld [vmem:[%s2377_s6 + $0x160] ss:$8 sps:$4 sm:$0xff]   ;;  %v1992_v46 = vld [vmem:[%s2377_s6 + $0x174] ss:$8 sps:$4 sm:$0xff]   ;;  %v1994_v47 = vld [vmem:[%s2377_s6 + $0x70] ss:$8 sps:$4 sm:$0xff]  }
  0x6b   : > { %v1995_v48 = vld [vmem:[%s2377_s6 + $0x170] ss:$8 sps:$4 sm:$0xff]   ;;  %v1996_v49 = vld [vmem:[%s2377_s6 + $0x84] ss:$8 sps:$4 sm:$0xff]   ;;  %v2000_v51 = vld [vmem:[%s2377_s6 + $0x80] ss:$8 sps:$4 sm:$0xff]  }
  0x6c   : > { %v1998_v50 = vld [vmem:[%s2377_s6 + $0x184] ss:$8 sps:$4 sm:$0xff]   ;;  %v2001_v52 = vld [vmem:[%s2377_s6 + $0x180] ss:$8 sps:$4 sm:$0xff]   ;;  %v2002_v53 = vld [vmem:[%s2377_s6 + $0x94] ss:$8 sps:$4 sm:$0xff]  }
  0x6d   : > { %913 = vmatpush1.bf16.msra.mxu0 %v1936_v5  ;;  %1840 = vmatpush1.bf16.msra.mxu1 %v1936_v5  ;;  %v2004_v54 = vld [vmem:[%s2377_s6 + $0x194] ss:$8 sps:$4 sm:$0xff]   ;;  %v2006_v55 = vld [vmem:[%s2377_s6 + $0x90] ss:$8 sps:$4 sm:$0xff]   ;;  %v2008_v57 = vld [vmem:[%s2377_s6 + $0xa4] ss:$8 sps:$4 sm:$0xff]  }
  0x6e   : > { %914 = vmatprep.subr.bf16.mxu0 %v2196_v0  ;;  %1825 = vmatprep.subr.bf16.mxu1 %v2196_v0  ;;  %v2007_v56 = vld [vmem:[%s2377_s6 + $0x190] ss:$8 sps:$4 sm:$0xff]   ;;  %v2010_v58 = vld [vmem:[%s2377_s6 + $0x1a4] ss:$8 sps:$4 sm:$0xff]   ;;  %v2012_v59 = vld [vmem:[%s2377_s6 + $0xa0] ss:$8 sps:$4 sm:$0xff]  }
  0x6f   : > { %v2013_v60 = vld [vmem:[%s2377_s6 + $0x1a0] ss:$8 sps:$4 sm:$0xff]   ;;  %v2014_v61 = vld [vmem:[%s2377_s6 + $0xb4] ss:$8 sps:$4 sm:$0xff]   ;;  %v2018_v63 = vld [vmem:[%s2377_s6 + $0xb0] ss:$8 sps:$4 sm:$0xff]  }
  0x70   : > { %v2016_v62 = vld [vmem:[%s2377_s6 + $0x1b4] ss:$8 sps:$4 sm:$0xff]   ;;  %v2020_v1 = vld [vmem:[%s2377_s6 + $0xc4] ss:$8 sps:$4 sm:$0xff]   ;;  %v2024_v3 = vld [vmem:[%s2377_s6 + $0xc0] ss:$8 sps:$4 sm:$0xff]  }
  0x71   : > { %915 = vmatpush1.bf16.msra.mxu0 %v1937_v7  ;;  %1841 = vmatpush1.bf16.msra.mxu1 %v1937_v7  ;;  %v2022_v2 = vld [vmem:[%s2377_s6 + $0x1c4] ss:$8 sps:$4 sm:$0xff]   ;;  %v2025_v4 = vld [vmem:[%s2377_s6 + $0x1c0] ss:$8 sps:$4 sm:$0xff]   ;;  %v2026_v5 = vld [vmem:[%s2377_s6 + $0xd4] ss:$8 sps:$4 sm:$0xff]  }
  0x72   : > { %916 = vmatprep.subr.bf16.mxu0 %v2196_v0  ;;  %1826 = vmatprep.subr.bf16.mxu1 %v2196_v0  ;;  %v2028_v6 = vld [vmem:[%s2377_s6 + $0x1d4] ss:$8 sps:$4 sm:$0xff]   ;;  %v2030_v7 = vld [vmem:[%s2377_s6 + $0xd0] ss:$8 sps:$4 sm:$0xff]  }
  0x73   : > { %v2031_v8 = vld [vmem:[%s2377_s6 + $0x1d0] ss:$8 sps:$4 sm:$0xff]  }
  0x75   : > { %917 = vmatpush1.bf16.msra.mxu0 %v1938_v9  ;;  %1842 = vmatpush1.bf16.msra.mxu1 %v1938_v9  ;;  %v2032_v9 = vld [vmem:[%s2377_s6 + $0xe4] ss:$8 sps:$4 sm:$0xff]  }
  0x76   : > { %918 = vmatprep.subr.bf16.mxu0 %v2196_v0  ;;  %1827 = vmatprep.subr.bf16.mxu1 %v2196_v0 }
  0x79   : > { %919 = vmatpush1.bf16.msra.mxu0 %v1939_v10  ;;  %1843 = vmatpush1.bf16.msra.mxu1 %v1939_v10  ;;  %v2034_v10 = vld [vmem:[%s2377_s6 + $0x1e4] ss:$8 sps:$4 sm:$0xff]  }
  0x7a   : > { %920 = vmatprep.subr.bf16.mxu0 %v2196_v0  ;;  %1828 = vmatprep.subr.bf16.mxu1 %v2196_v0 }
  0x7d   : > { %921 = vmatpush1.bf16.msra.mxu0 %v1940_v11  ;;  %1844 = vmatpush1.bf16.msra.mxu1 %v1940_v11  ;;  %v2036_v11 = vld [vmem:[%s2377_s6 + $0xe0] ss:$8 sps:$4 sm:$0xff]  }
  0x7e   : > { %922 = vmatprep.subr.bf16.mxu0 %v2196_v0  ;;  %1829 = vmatprep.subr.bf16.mxu1 %v2196_v0 }
  0x81   : > { %923 = vmatpush1.bf16.msra.mxu0 %v1941_v12  ;;  %1845 = vmatpush1.bf16.msra.mxu1 %v1941_v12  ;;  %v2037_v12 = vld [vmem:[%s2377_s6 + $0x1e0] ss:$8 sps:$4 sm:$0xff]  }
  0x82   : > { %924 = vmatprep.subr.bf16.mxu0 %v2196_v0  ;;  %1830 = vmatprep.subr.bf16.mxu1 %v2196_v0 }
  0x85   : > { %925 = vmatpush1.bf16.msra.mxu0 %v1942_v13  ;;  %1846 = vmatpush1.bf16.msra.mxu1 %v1942_v13  ;;  %v2038_v13 = vld [vmem:[%s2377_s6 + $0xf4] ss:$8 sps:$4 sm:$0xff]  }
  0x86   : > { %926 = vmatprep.subr.bf16.mxu0 %v2196_v0  ;;  %1831 = vmatprep.subr.bf16.mxu1 %v2196_v0 }
  0x89   : > { %927 = vmatpush1.bf16.msra.mxu0 %v1943_v14  ;;  %1847 = vmatpush1.bf16.msra.mxu1 %v1943_v14  ;;  %v2040_v14 = vld [vmem:[%s2377_s6 + $0x1f4] ss:$8 sps:$4 sm:$0xff]  }
  0x8a   : > { %928 = vmatprep.subr.bf16.mxu0 %v2196_v0  ;;  %1832 = vmatprep.subr.bf16.mxu1 %v2196_v0 }
  0x8d   : > { %929 = vmatpush1.bf16.msra.mxu0 %v1944_v15  ;;  %1848 = vmatpush1.bf16.msra.mxu1 %v1944_v15  ;;  %v2042_v15 = vld [vmem:[%s2377_s6 + $0xf0] ss:$8 sps:$4 sm:$0xff]  }
  0x8e   : > { %930 = vmatprep.subr.bf16.mxu0 %v2196_v0  ;;  %1833 = vmatprep.subr.bf16.mxu1 %v2196_v0 }
  0x91   : > { %931 = vmatpush1.bf16.msra.mxu0 %v1945_v16  ;;  %1849 = vmatpush1.bf16.msra.mxu1 %v1945_v16  ;;  %v2043_v16 = vld [vmem:[%s2377_s6 + $0x1f0] ss:$8 sps:$4 sm:$0xff]  }
  0x92   : > { %932 = vmatprep.subr.bf16.mxu0 %v2196_v0  ;;  %1834 = vmatprep.subr.bf16.mxu1 %v2196_v0 }
  0x95   : > { %933 = vmatpush1.bf16.msra.mxu0 %v1946_v17  ;;  %1850 = vmatpush1.bf16.msra.mxu1 %v1946_v17  ;;  %v2486_v17 = vld [vmem:[%s2677_s2] ss:$0 sm:$0xff] }
  0x96   : > { %934 = vmatprep.subr.bf16.mxu0 %v2196_v0  ;;  %1835 = vmatprep.subr.bf16.mxu1 %v2196_v0  ;;  %v2019_v0 = vld [vmem:[%s2377_s6 + $0x1b0] ss:$8 sps:$4 sm:$0xff]  }
  0x99   : > { %935 = vmatpush1.bf16.msra.mxu0 %v1947_v18  ;;  %1851 = vmatpush1.bf16.msra.mxu1 %v1947_v18 }
  0x9c   : > { %937 = vmatmul.mubr.bf16.vlgmr.msra.gmra.mrb[0].mxu0 %v1948_v19  ;;  %1065 = vmatmul.mubr.bf16.vlgmr.msra.gmra.mrb[0].mxu1 %v1951_v20 }
  0x9d   : > { %944 = vmatprep.mubr.bf16.mxu0 %v1954_v21  ;;  %1072 = vmatprep.mubr.bf16.mxu1 %v1956_v22 }
  0xa4   : > { %945 = vmatmul.mubr.bf16.gmra.mrb[4].mxu0 %v1958_v23  ;;  %1073 = vmatmul.mubr.bf16.gmra.mrb[4].mxu1 %v1959_v24 }
  0xa5   : > { %952 = vmatprep.mubr.bf16.mxu0 %v1960_v25  ;;  %1080 = vmatprep.mubr.bf16.mxu1 %v1962_v26 }
  0xac   : > { %953 = vmatmul.mubr.bf16.gmra.mrb[8].mxu0 %v1964_v27  ;;  %1081 = vmatmul.mubr.bf16.gmra.mrb[8].mxu1 %v1965_v28 }
  0xad   : > { %960 = vmatprep.mubr.bf16.mxu0 %v1966_v29  ;;  %1088 = vmatprep.mubr.bf16.mxu1 %v1968_v30 }
  0xb4   : > { %961 = vmatmul.mubr.bf16.gmra.mrb[12].mxu0 %v1970_v31  ;;  %1089 = vmatmul.mubr.bf16.gmra.mrb[12].mxu1 %v1971_v32 }
  0xb5   : > { %968 = vmatprep.mubr.bf16.mxu0 %v1972_v33  ;;  %1096 = vmatprep.mubr.bf16.mxu1 %v1974_v34 }
  0xbc   : > { %969 = vmatmul.mubr.bf16.gmra.mrb[16].mxu0 %v1976_v35  ;;  %1097 = vmatmul.mubr.bf16.gmra.mrb[16].mxu1 %v1977_v36 }
  0xbd   : > { %976 = vmatprep.mubr.bf16.mxu0 %v1978_v37  ;;  %1104 = vmatprep.mubr.bf16.mxu1 %v1980_v38 }
  0xc4   : > { %977 = vmatmul.mubr.bf16.gmra.mrb[20].mxu0 %v1982_v39  ;;  %1105 = vmatmul.mubr.bf16.gmra.mrb[20].mxu1 %v1983_v40 }
  0xc5   : > { %984 = vmatprep.mubr.bf16.mxu0 %v1984_v41  ;;  %1112 = vmatprep.mubr.bf16.mxu1 %v1986_v42 }
  0xcc   : > { %985 = vmatmul.mubr.bf16.gmra.mrb[24].mxu0 %v1988_v43  ;;  %1113 = vmatmul.mubr.bf16.gmra.mrb[24].mxu1 %v1989_v44 }
  0xcd   : > { %992 = vmatprep.mubr.bf16.mxu0 %v1990_v45  ;;  %1120 = vmatprep.mubr.bf16.mxu1 %v1992_v46 }
  0xd4   : > { %993 = vmatmul.mubr.bf16.gmra.mrb[28].mxu0 %v1994_v47  ;;  %1121 = vmatmul.mubr.bf16.gmra.mrb[28].mxu1 %v1995_v48 }
  0xd5   : > { %1000 = vmatprep.mubr.bf16.mxu0 %v1996_v49  ;;  %1128 = vmatprep.mubr.bf16.mxu1 %v1998_v50 }
  0xdc   : > { %1001 = vmatmul.mubr.bf16.gmra.mrb[32].mxu0 %v2000_v51  ;;  %1129 = vmatmul.mubr.bf16.gmra.mrb[32].mxu1 %v2001_v52 }
  0xdd   : > { %1008 = vmatprep.mubr.bf16.mxu0 %v2002_v53  ;;  %1136 = vmatprep.mubr.bf16.mxu1 %v2004_v54 }
  0xe4   : > { %1009 = vmatmul.mubr.bf16.gmra.mrb[36].mxu0 %v2006_v55  ;;  %1137 = vmatmul.mubr.bf16.gmra.mrb[36].mxu1 %v2007_v56 }
  0xe5   : > { %1016 = vmatprep.mubr.bf16.mxu0 %v2008_v57  ;;  %1144 = vmatprep.mubr.bf16.mxu1 %v2010_v58 }
  0xec   : > { %1017 = vmatmul.mubr.bf16.gmra.mrb[40].mxu0 %v2012_v59  ;;  %1145 = vmatmul.mubr.bf16.gmra.mrb[40].mxu1 %v2013_v60 }
  0xed   : > { %1024 = vmatprep.mubr.bf16.mxu0 %v2014_v61  ;;  %1152 = vmatprep.mubr.bf16.mxu1 %v2016_v62 }
  0xf4   : > { %1025 = vmatmul.mubr.bf16.gmra.mrb[44].mxu0 %v2018_v63  ;;  %1153 = vmatmul.mubr.bf16.gmra.mrb[44].mxu1 %v2019_v0 }
  0xf5   : > { %1032 = vmatprep.mubr.bf16.mxu0 %v2020_v1  ;;  %1160 = vmatprep.mubr.bf16.mxu1 %v2022_v2 }
  0xfc   : > { %1033 = vmatmul.mubr.bf16.gmra.mrb[48].mxu0 %v2024_v3  ;;  %1161 = vmatmul.mubr.bf16.gmra.mrb[48].mxu1 %v2025_v4 }
  0xfd   : > { %1040 = vmatprep.mubr.bf16.mxu0 %v2026_v5  ;;  %1168 = vmatprep.mubr.bf16.mxu1 %v2028_v6 }
 0x104   : > { %1041 = vmatmul.mubr.bf16.gmra.mrb[52].mxu0 %v2030_v7  ;;  %1169 = vmatmul.mubr.bf16.gmra.mrb[52].mxu1 %v2031_v8 }
 0x105   : > { %1048 = vmatprep.mubr.bf16.mxu0 %v2032_v9  ;;  %1176 = vmatprep.mubr.bf16.mxu1 %v2034_v10 }
 0x10c   : > { %1049 = vmatmul.mubr.bf16.gmra.mrb[56].mxu0 %v2036_v11  ;;  %1177 = vmatmul.mubr.bf16.gmra.mrb[56].mxu1 %v2037_v12 }
 0x10d   : > { %1056 = vmatprep.mubr.bf16.mxu0 %v2038_v13  ;;  %1184 = vmatprep.mubr.bf16.mxu1 %v2040_v14 }
 0x114   : > { %1057 = vmatmul.mubr.bf16.gmra.mrb[60].mxu0 %v2042_v15  ;;  %1185 = vmatmul.mubr.bf16.gmra.mrb[60].mxu1 %v2043_v16 }
 0x16f   : > { %v938_v18 = vpop.f32.mrb[0].mxu0  ;;  %v1066_v19 = vpop.f32.mrb[0].mxu1 }
 0x170   : > { %v1395_v20 = vadd.f32 %v2486_v17, %v938_v18  ;;  %v1427_v21 = vadd.f32 %v2486_v17, %v1066_v19  ;;  %v940_v22 = vpop.f32.mrb[1].mxu0  ;;  %v1068_v23 = vpop.f32.mrb[1].mxu1 }
 0x171   : > { %v941_v24 = vpop.f32.mrb[2].mxu0  ;;  %v1069_v25 = vpop.f32.mrb[2].mxu1 }
 0x172   : > { %v1459_v26 = vmax.f32 %v1395_v20, 0.0  ;;  %v1491_v27 = vmax.f32 %v1427_v21, 0.0  ;;  %v1396_v28 = vadd.f32 %v2486_v17, %v941_v24  ;;  %v1428_v29 = vadd.f32 %v2486_v17, %v1069_v25  ;;  %v943_v30 = vpop.f32.mrb[3].mxu0  ;;  %v1071_v31 = vpop.f32.mrb[3].mxu1 }
 0x174   : > { %1523 = vst [vmem:[%s2494_s24] sm:$0xff] %v1459_v26  ;;  %1555 = vst [vmem:[%s2494_s24 + $0x100] sm:$0xff] %v1491_v27  ;;  %v1460_v32 = vmax.f32 %v1396_v28, 0.0  ;;  %v1492_v33 = vmax.f32 %v1428_v29, 0.0 }
 0x176   : > { %1524 = vst [vmem:[%s2494_s24 + $0x8] sm:$0xff] %v1460_v32  ;;  %1556 = vst [vmem:[%s2494_s24 + $0x108] sm:$0xff] %v1492_v33 }
 0x177   : > { %v946_v34 = vpop.f32.mrb[4].mxu0  ;;  %v1074_v35 = vpop.f32.mrb[4].mxu1 }
 0x178   : > { %v1397_v36 = vadd.f32 %v2486_v17, %v946_v34  ;;  %v1429_v37 = vadd.f32 %v2486_v17, %v1074_v35  ;;  %v948_v38 = vpop.f32.mrb[5].mxu0  ;;  %v1076_v39 = vpop.f32.mrb[5].mxu1 }
 0x179   : > { %v949_v40 = vpop.f32.mrb[6].mxu0  ;;  %v1077_v41 = vpop.f32.mrb[6].mxu1 }
 0x17a   : > { %v1461_v42 = vmax.f32 %v1397_v36, 0.0  ;;  %v1493_v43 = vmax.f32 %v1429_v37, 0.0  ;;  %v1398_v44 = vadd.f32 %v2486_v17, %v949_v40  ;;  %v1430_v45 = vadd.f32 %v2486_v17, %v1077_v41  ;;  %v951_v46 = vpop.f32.mrb[7].mxu0  ;;  %v1079_v47 = vpop.f32.mrb[7].mxu1 }
 0x17c   : > { %1525 = vst [vmem:[%s2494_s24 + $0x10] sm:$0xff] %v1461_v42  ;;  %1557 = vst [vmem:[%s2494_s24 + $0x110] sm:$0xff] %v1493_v43  ;;  %v1462_v48 = vmax.f32 %v1398_v44, 0.0  ;;  %v1494_v49 = vmax.f32 %v1430_v45, 0.0 }
 0x17e   : > { %1526 = vst [vmem:[%s2494_s24 + $0x18] sm:$0xff] %v1462_v48  ;;  %1558 = vst [vmem:[%s2494_s24 + $0x118] sm:$0xff] %v1494_v49 }
 0x17f   : > { %v954_v50 = vpop.f32.mrb[8].mxu0  ;;  %v1082_v51 = vpop.f32.mrb[8].mxu1 }
 0x180   : > { %v1399_v52 = vadd.f32 %v2486_v17, %v954_v50  ;;  %v1431_v53 = vadd.f32 %v2486_v17, %v1082_v51  ;;  %v956_v54 = vpop.f32.mrb[9].mxu0  ;;  %v1084_v55 = vpop.f32.mrb[9].mxu1 }
 0x181   : > { %v957_v56 = vpop.f32.mrb[10].mxu0  ;;  %v1085_v57 = vpop.f32.mrb[10].mxu1 }
 0x182   : > { %v1463_v58 = vmax.f32 %v1399_v52, 0.0  ;;  %v1495_v59 = vmax.f32 %v1431_v53, 0.0  ;;  %v1400_v60 = vadd.f32 %v2486_v17, %v957_v56  ;;  %v1432_v61 = vadd.f32 %v2486_v17, %v1085_v57  ;;  %v959_v62 = vpop.f32.mrb[11].mxu0  ;;  %v1087_v63 = vpop.f32.mrb[11].mxu1 }
 0x184   : > { %1527 = vst [vmem:[%s2494_s24 + $0x20] sm:$0xff] %v1463_v58  ;;  %1559 = vst [vmem:[%s2494_s24 + $0x120] sm:$0xff] %v1495_v59  ;;  %v1464_v0 = vmax.f32 %v1400_v60, 0.0  ;;  %v1496_v1 = vmax.f32 %v1432_v61, 0.0 }
 0x186   : > { %1528 = vst [vmem:[%s2494_s24 + $0x28] sm:$0xff] %v1464_v0  ;;  %1560 = vst [vmem:[%s2494_s24 + $0x128] sm:$0xff] %v1496_v1 }
 0x187   : > { %v962_v2 = vpop.f32.mrb[12].mxu0  ;;  %v1090_v3 = vpop.f32.mrb[12].mxu1 }
 0x188   : > { %v1401_v4 = vadd.f32 %v2486_v17, %v962_v2  ;;  %v1433_v5 = vadd.f32 %v2486_v17, %v1090_v3  ;;  %v964_v6 = vpop.f32.mrb[13].mxu0  ;;  %v1092_v7 = vpop.f32.mrb[13].mxu1 }
 0x189   : > { %v965_v8 = vpop.f32.mrb[14].mxu0  ;;  %v1093_v9 = vpop.f32.mrb[14].mxu1 }
 0x18a   : > { %v1465_v10 = vmax.f32 %v1401_v4, 0.0  ;;  %v1497_v11 = vmax.f32 %v1433_v5, 0.0  ;;  %v1402_v12 = vadd.f32 %v2486_v17, %v965_v8  ;;  %v1434_v13 = vadd.f32 %v2486_v17, %v1093_v9  ;;  %v967_v14 = vpop.f32.mrb[15].mxu0  ;;  %v1095_v15 = vpop.f32.mrb[15].mxu1 }
 0x18c   : > { %1529 = vst [vmem:[%s2494_s24 + $0x30] sm:$0xff] %v1465_v10  ;;  %1561 = vst [vmem:[%s2494_s24 + $0x130] sm:$0xff] %v1497_v11  ;;  %v1466_v16 = vmax.f32 %v1402_v12, 0.0  ;;  %v1498_v18 = vmax.f32 %v1434_v13, 0.0 }
 0x18e   : > { %1530 = vst [vmem:[%s2494_s24 + $0x38] sm:$0xff] %v1466_v16  ;;  %1562 = vst [vmem:[%s2494_s24 + $0x138] sm:$0xff] %v1498_v18 }
 0x18f   : > { %v970_v19 = vpop.f32.mrb[16].mxu0  ;;  %v1098_v20 = vpop.f32.mrb[16].mxu1 }
 0x190   : > { %v1403_v21 = vadd.f32 %v2486_v17, %v970_v19  ;;  %v1435_v22 = vadd.f32 %v2486_v17, %v1098_v20  ;;  %v972_v23 = vpop.f32.mrb[17].mxu0  ;;  %v1100_v24 = vpop.f32.mrb[17].mxu1 }
 0x191   : > { %v973_v25 = vpop.f32.mrb[18].mxu0  ;;  %v1101_v26 = vpop.f32.mrb[18].mxu1 }
 0x192   : > { %v1467_v27 = vmax.f32 %v1403_v21, 0.0  ;;  %v1499_v28 = vmax.f32 %v1435_v22, 0.0  ;;  %v1404_v29 = vadd.f32 %v2486_v17, %v973_v25  ;;  %v1436_v30 = vadd.f32 %v2486_v17, %v1101_v26  ;;  %v975_v31 = vpop.f32.mrb[19].mxu0  ;;  %v1103_v32 = vpop.f32.mrb[19].mxu1 }
 0x194   : > { %1531 = vst [vmem:[%s2494_s24 + $0x40] sm:$0xff] %v1467_v27  ;;  %1563 = vst [vmem:[%s2494_s24 + $0x140] sm:$0xff] %v1499_v28  ;;  %v1468_v33 = vmax.f32 %v1404_v29, 0.0  ;;  %v1500_v34 = vmax.f32 %v1436_v30, 0.0 }
 0x196   : > { %1532 = vst [vmem:[%s2494_s24 + $0x48] sm:$0xff] %v1468_v33  ;;  %1564 = vst [vmem:[%s2494_s24 + $0x148] sm:$0xff] %v1500_v34 }
 0x197   : > { %v978_v35 = vpop.f32.mrb[20].mxu0  ;;  %v1106_v36 = vpop.f32.mrb[20].mxu1 }
 0x198   : > { %v1405_v37 = vadd.f32 %v2486_v17, %v978_v35  ;;  %v1437_v38 = vadd.f32 %v2486_v17, %v1106_v36  ;;  %v980_v39 = vpop.f32.mrb[21].mxu0  ;;  %v1108_v40 = vpop.f32.mrb[21].mxu1 }
 0x199   : > { %v981_v41 = vpop.f32.mrb[22].mxu0  ;;  %v1109_v42 = vpop.f32.mrb[22].mxu1 }
 0x19a   : > { %v1469_v43 = vmax.f32 %v1405_v37, 0.0  ;;  %v1501_v44 = vmax.f32 %v1437_v38, 0.0  ;;  %v1406_v45 = vadd.f32 %v2486_v17, %v981_v41  ;;  %v1438_v46 = vadd.f32 %v2486_v17, %v1109_v42  ;;  %v983_v47 = vpop.f32.mrb[23].mxu0  ;;  %v1111_v48 = vpop.f32.mrb[23].mxu1 }
 0x19c   : > { %1533 = vst [vmem:[%s2494_s24 + $0x50] sm:$0xff] %v1469_v43  ;;  %1565 = vst [vmem:[%s2494_s24 + $0x150] sm:$0xff] %v1501_v44  ;;  %v1470_v49 = vmax.f32 %v1406_v45, 0.0  ;;  %v1502_v50 = vmax.f32 %v1438_v46, 0.0 }
 0x19e   : > { %1534 = vst [vmem:[%s2494_s24 + $0x58] sm:$0xff] %v1470_v49  ;;  %1566 = vst [vmem:[%s2494_s24 + $0x158] sm:$0xff] %v1502_v50 }
 0x19f   : > { %v986_v51 = vpop.f32.mrb[24].mxu0  ;;  %v1114_v52 = vpop.f32.mrb[24].mxu1 }
 0x1a0   : > { %v1407_v53 = vadd.f32 %v2486_v17, %v986_v51  ;;  %v1439_v54 = vadd.f32 %v2486_v17, %v1114_v52  ;;  %v988_v55 = vpop.f32.mrb[25].mxu0  ;;  %v1116_v56 = vpop.f32.mrb[25].mxu1 }
 0x1a1   : > { %v989_v57 = vpop.f32.mrb[26].mxu0  ;;  %v1117_v58 = vpop.f32.mrb[26].mxu1 }
 0x1a2   : > { %v1471_v59 = vmax.f32 %v1407_v53, 0.0  ;;  %v1503_v60 = vmax.f32 %v1439_v54, 0.0  ;;  %v1408_v61 = vadd.f32 %v2486_v17, %v989_v57  ;;  %v1440_v62 = vadd.f32 %v2486_v17, %v1117_v58  ;;  %v991_v63 = vpop.f32.mrb[27].mxu0  ;;  %v1119_v0 = vpop.f32.mrb[27].mxu1 }
 0x1a4   : > { %1535 = vst [vmem:[%s2494_s24 + $0x60] sm:$0xff] %v1471_v59  ;;  %1567 = vst [vmem:[%s2494_s24 + $0x160] sm:$0xff] %v1503_v60  ;;  %v1472_v1 = vmax.f32 %v1408_v61, 0.0  ;;  %v1504_v2 = vmax.f32 %v1440_v62, 0.0 }
 0x1a6   : > { %1536 = vst [vmem:[%s2494_s24 + $0x68] sm:$0xff] %v1472_v1  ;;  %1568 = vst [vmem:[%s2494_s24 + $0x168] sm:$0xff] %v1504_v2 }
 0x1a7   : > { %v994_v3 = vpop.f32.mrb[28].mxu0  ;;  %v1122_v4 = vpop.f32.mrb[28].mxu1 }
 0x1a8   : > { %v1409_v5 = vadd.f32 %v2486_v17, %v994_v3  ;;  %v1441_v6 = vadd.f32 %v2486_v17, %v1122_v4  ;;  %v996_v7 = vpop.f32.mrb[29].mxu0  ;;  %v1124_v8 = vpop.f32.mrb[29].mxu1 }
 0x1a9   : > { %v997_v9 = vpop.f32.mrb[30].mxu0  ;;  %v1125_v10 = vpop.f32.mrb[30].mxu1 }
 0x1aa   : > { %v1473_v11 = vmax.f32 %v1409_v5, 0.0  ;;  %v1505_v12 = vmax.f32 %v1441_v6, 0.0  ;;  %v1410_v13 = vadd.f32 %v2486_v17, %v997_v9  ;;  %v1442_v14 = vadd.f32 %v2486_v17, %v1125_v10  ;;  %v999_v15 = vpop.f32.mrb[31].mxu0  ;;  %v1127_v16 = vpop.f32.mrb[31].mxu1 }
 0x1ac   : > { %1537 = vst [vmem:[%s2494_s24 + $0x70] sm:$0xff] %v1473_v11  ;;  %1569 = vst [vmem:[%s2494_s24 + $0x170] sm:$0xff] %v1505_v12  ;;  %v1474_v18 = vmax.f32 %v1410_v13, 0.0  ;;  %v1506_v19 = vmax.f32 %v1442_v14, 0.0 }
 0x1ae   : > { %1538 = vst [vmem:[%s2494_s24 + $0x78] sm:$0xff] %v1474_v18  ;;  %1570 = vst [vmem:[%s2494_s24 + $0x178] sm:$0xff] %v1506_v19 }
 0x1af   : > { %v1002_v20 = vpop.f32.mrb[32].mxu0  ;;  %v1130_v21 = vpop.f32.mrb[32].mxu1 }
 0x1b0   : > { %v1411_v22 = vadd.f32 %v2486_v17, %v1002_v20  ;;  %v1443_v23 = vadd.f32 %v2486_v17, %v1130_v21  ;;  %v1004_v24 = vpop.f32.mrb[33].mxu0  ;;  %v1132_v25 = vpop.f32.mrb[33].mxu1 }
 0x1b1   : > { %v1005_v26 = vpop.f32.mrb[34].mxu0  ;;  %v1133_v27 = vpop.f32.mrb[34].mxu1 }
 0x1b2   : > { %v1475_v28 = vmax.f32 %v1411_v22, 0.0  ;;  %v1507_v29 = vmax.f32 %v1443_v23, 0.0  ;;  %v1412_v30 = vadd.f32 %v2486_v17, %v1005_v26  ;;  %v1444_v31 = vadd.f32 %v2486_v17, %v1133_v27  ;;  %v1007_v32 = vpop.f32.mrb[35].mxu0  ;;  %v1135_v33 = vpop.f32.mrb[35].mxu1 }
 0x1b4   : > { %1539 = vst [vmem:[%s2494_s24 + $0x80] sm:$0xff] %v1475_v28  ;;  %1571 = vst [vmem:[%s2494_s24 + $0x180] sm:$0xff] %v1507_v29  ;;  %v1476_v34 = vmax.f32 %v1412_v30, 0.0  ;;  %v1508_v35 = vmax.f32 %v1444_v31, 0.0 }
 0x1b6   : > { %1540 = vst [vmem:[%s2494_s24 + $0x88] sm:$0xff] %v1476_v34  ;;  %1572 = vst [vmem:[%s2494_s24 + $0x188] sm:$0xff] %v1508_v35 }
 0x1b7   : > { %v1010_v36 = vpop.f32.mrb[36].mxu0  ;;  %v1138_v37 = vpop.f32.mrb[36].mxu1 }
 0x1b8   : > { %v1413_v38 = vadd.f32 %v2486_v17, %v1010_v36  ;;  %v1445_v39 = vadd.f32 %v2486_v17, %v1138_v37  ;;  %v1012_v40 = vpop.f32.mrb[37].mxu0  ;;  %v1140_v41 = vpop.f32.mrb[37].mxu1 }
 0x1b9   : > { %v1013_v42 = vpop.f32.mrb[38].mxu0  ;;  %v1141_v43 = vpop.f32.mrb[38].mxu1 }
 0x1ba   : > { %v1477_v44 = vmax.f32 %v1413_v38, 0.0  ;;  %v1509_v45 = vmax.f32 %v1445_v39, 0.0  ;;  %v1414_v46 = vadd.f32 %v2486_v17, %v1013_v42  ;;  %v1446_v47 = vadd.f32 %v2486_v17, %v1141_v43  ;;  %v1015_v48 = vpop.f32.mrb[39].mxu0  ;;  %v1143_v49 = vpop.f32.mrb[39].mxu1 }
 0x1bc   : > { %1541 = vst [vmem:[%s2494_s24 + $0x90] sm:$0xff] %v1477_v44  ;;  %1573 = vst [vmem:[%s2494_s24 + $0x190] sm:$0xff] %v1509_v45  ;;  %v1478_v50 = vmax.f32 %v1414_v46, 0.0  ;;  %v1510_v51 = vmax.f32 %v1446_v47, 0.0 }
 0x1be   : > { %1542 = vst [vmem:[%s2494_s24 + $0x98] sm:$0xff] %v1478_v50  ;;  %1574 = vst [vmem:[%s2494_s24 + $0x198] sm:$0xff] %v1510_v51 }
 0x1bf   : > { %v1018_v52 = vpop.f32.mrb[40].mxu0  ;;  %v1146_v53 = vpop.f32.mrb[40].mxu1 }
 0x1c0   : > { %v1415_v54 = vadd.f32 %v2486_v17, %v1018_v52  ;;  %v1447_v55 = vadd.f32 %v2486_v17, %v1146_v53  ;;  %v1020_v56 = vpop.f32.mrb[41].mxu0  ;;  %v1148_v57 = vpop.f32.mrb[41].mxu1 }
 0x1c1   : > { %v1021_v58 = vpop.f32.mrb[42].mxu0  ;;  %v1149_v59 = vpop.f32.mrb[42].mxu1 }
 0x1c2   : > { %v1479_v60 = vmax.f32 %v1415_v54, 0.0  ;;  %v1511_v61 = vmax.f32 %v1447_v55, 0.0  ;;  %v1416_v62 = vadd.f32 %v2486_v17, %v1021_v58  ;;  %v1448_v63 = vadd.f32 %v2486_v17, %v1149_v59  ;;  %v1023_v0 = vpop.f32.mrb[43].mxu0  ;;  %v1151_v1 = vpop.f32.mrb[43].mxu1 }
 0x1c4   : > { %1543 = vst [vmem:[%s2494_s24 + $0xa0] sm:$0xff] %v1479_v60  ;;  %1575 = vst [vmem:[%s2494_s24 + $0x1a0] sm:$0xff] %v1511_v61  ;;  %v1480_v2 = vmax.f32 %v1416_v62, 0.0  ;;  %v1512_v3 = vmax.f32 %v1448_v63, 0.0 }
 0x1c6   : > { %1544 = vst [vmem:[%s2494_s24 + $0xa8] sm:$0xff] %v1480_v2  ;;  %1576 = vst [vmem:[%s2494_s24 + $0x1a8] sm:$0xff] %v1512_v3 }
 0x1c7   : > { %v1026_v4 = vpop.f32.mrb[44].mxu0  ;;  %v1154_v5 = vpop.f32.mrb[44].mxu1 }
 0x1c8   : > { %v1417_v6 = vadd.f32 %v2486_v17, %v1026_v4  ;;  %v1449_v7 = vadd.f32 %v2486_v17, %v1154_v5  ;;  %v1028_v8 = vpop.f32.mrb[45].mxu0  ;;  %v1156_v9 = vpop.f32.mrb[45].mxu1 }
 0x1c9   : > { %v1029_v10 = vpop.f32.mrb[46].mxu0  ;;  %v1157_v11 = vpop.f32.mrb[46].mxu1 }
 0x1ca   : > { %v1481_v12 = vmax.f32 %v1417_v6, 0.0  ;;  %v1513_v13 = vmax.f32 %v1449_v7, 0.0  ;;  %v1418_v14 = vadd.f32 %v2486_v17, %v1029_v10  ;;  %v1450_v15 = vadd.f32 %v2486_v17, %v1157_v11  ;;  %v1031_v16 = vpop.f32.mrb[47].mxu0  ;;  %v1159_v18 = vpop.f32.mrb[47].mxu1 }
 0x1cc   : > { %1545 = vst [vmem:[%s2494_s24 + $0xb0] sm:$0xff] %v1481_v12  ;;  %1577 = vst [vmem:[%s2494_s24 + $0x1b0] sm:$0xff] %v1513_v13  ;;  %v1482_v19 = vmax.f32 %v1418_v14, 0.0  ;;  %v1514_v20 = vmax.f32 %v1450_v15, 0.0 }
 0x1ce   : > { %1546 = vst [vmem:[%s2494_s24 + $0xb8] sm:$0xff] %v1482_v19  ;;  %1578 = vst [vmem:[%s2494_s24 + $0x1b8] sm:$0xff] %v1514_v20 }
 0x1cf   : > { %v1034_v21 = vpop.f32.mrb[48].mxu0  ;;  %v1162_v22 = vpop.f32.mrb[48].mxu1 }
 0x1d0   : > { %v1419_v23 = vadd.f32 %v2486_v17, %v1034_v21  ;;  %v1451_v24 = vadd.f32 %v2486_v17, %v1162_v22  ;;  %v1036_v25 = vpop.f32.mrb[49].mxu0  ;;  %v1164_v26 = vpop.f32.mrb[49].mxu1 }
 0x1d1   : > { %v1037_v27 = vpop.f32.mrb[50].mxu0  ;;  %v1165_v28 = vpop.f32.mrb[50].mxu1 }
 0x1d2   : > { %v1483_v29 = vmax.f32 %v1419_v23, 0.0  ;;  %v1515_v30 = vmax.f32 %v1451_v24, 0.0  ;;  %v1420_v31 = vadd.f32 %v2486_v17, %v1037_v27  ;;  %v1452_v32 = vadd.f32 %v2486_v17, %v1165_v28  ;;  %v1039_v33 = vpop.f32.mrb[51].mxu0  ;;  %v1167_v34 = vpop.f32.mrb[51].mxu1 }
 0x1d4   : > { %1547 = vst [vmem:[%s2494_s24 + $0xc0] sm:$0xff] %v1483_v29  ;;  %1579 = vst [vmem:[%s2494_s24 + $0x1c0] sm:$0xff] %v1515_v30  ;;  %v1484_v35 = vmax.f32 %v1420_v31, 0.0  ;;  %v1516_v36 = vmax.f32 %v1452_v32, 0.0 }
 0x1d6   : > { %1548 = vst [vmem:[%s2494_s24 + $0xc8] sm:$0xff] %v1484_v35  ;;  %1580 = vst [vmem:[%s2494_s24 + $0x1c8] sm:$0xff] %v1516_v36 }
 0x1d7   : > { %v1042_v37 = vpop.f32.mrb[52].mxu0  ;;  %v1170_v38 = vpop.f32.mrb[52].mxu1 }
 0x1d8   : > { %v1421_v39 = vadd.f32 %v2486_v17, %v1042_v37  ;;  %v1453_v40 = vadd.f32 %v2486_v17, %v1170_v38  ;;  %v1044_v41 = vpop.f32.mrb[53].mxu0  ;;  %v1172_v42 = vpop.f32.mrb[53].mxu1 }
 0x1d9   : > { %v1045_v43 = vpop.f32.mrb[54].mxu0  ;;  %v1173_v44 = vpop.f32.mrb[54].mxu1 }
 0x1da   : > { %v1485_v45 = vmax.f32 %v1421_v39, 0.0  ;;  %v1517_v46 = vmax.f32 %v1453_v40, 0.0  ;;  %v1422_v47 = vadd.f32 %v2486_v17, %v1045_v43  ;;  %v1454_v48 = vadd.f32 %v2486_v17, %v1173_v44  ;;  %v1047_v49 = vpop.f32.mrb[55].mxu0  ;;  %v1175_v50 = vpop.f32.mrb[55].mxu1 }
 0x1dc   : > { %1549 = vst [vmem:[%s2494_s24 + $0xd0] sm:$0xff] %v1485_v45  ;;  %1581 = vst [vmem:[%s2494_s24 + $0x1d0] sm:$0xff] %v1517_v46  ;;  %v1486_v51 = vmax.f32 %v1422_v47, 0.0  ;;  %v1518_v52 = vmax.f32 %v1454_v48, 0.0 }
 0x1de   : > { %1550 = vst [vmem:[%s2494_s24 + $0xd8] sm:$0xff] %v1486_v51  ;;  %1582 = vst [vmem:[%s2494_s24 + $0x1d8] sm:$0xff] %v1518_v52 }
 0x1df   : > { %v1050_v53 = vpop.f32.mrb[56].mxu0  ;;  %v1178_v54 = vpop.f32.mrb[56].mxu1 }
 0x1e0   : > { %v1423_v55 = vadd.f32 %v2486_v17, %v1050_v53  ;;  %v1455_v56 = vadd.f32 %v2486_v17, %v1178_v54  ;;  %v1052_v57 = vpop.f32.mrb[57].mxu0  ;;  %v1180_v58 = vpop.f32.mrb[57].mxu1 }
 0x1e1   : > { %v1053_v59 = vpop.f32.mrb[58].mxu0  ;;  %v1181_v60 = vpop.f32.mrb[58].mxu1 }
 0x1e2   : > { %v1487_v61 = vmax.f32 %v1423_v55, 0.0  ;;  %v1519_v62 = vmax.f32 %v1455_v56, 0.0  ;;  %v1424_v63 = vadd.f32 %v2486_v17, %v1053_v59  ;;  %v1456_v0 = vadd.f32 %v2486_v17, %v1181_v60  ;;  %v1055_v1 = vpop.f32.mrb[59].mxu0  ;;  %v1183_v2 = vpop.f32.mrb[59].mxu1 }
 0x1e4   : > { %1551 = vst [vmem:[%s2494_s24 + $0xe0] sm:$0xff] %v1487_v61  ;;  %1583 = vst [vmem:[%s2494_s24 + $0x1e0] sm:$0xff] %v1519_v62  ;;  %v1488_v3 = vmax.f32 %v1424_v63, 0.0  ;;  %v1520_v4 = vmax.f32 %v1456_v0, 0.0 }
 0x1e6   : > { %1552 = vst [vmem:[%s2494_s24 + $0xe8] sm:$0xff] %v1488_v3  ;;  %1584 = vst [vmem:[%s2494_s24 + $0x1e8] sm:$0xff] %v1520_v4 }
 0x1e7   : > { %v1058_v5 = vpop.f32.mrb[60].mxu0  ;;  %v1186_v6 = vpop.f32.mrb[60].mxu1 }
 0x1e8   : > { %v1425_v7 = vadd.f32 %v2486_v17, %v1058_v5  ;;  %v1457_v8 = vadd.f32 %v2486_v17, %v1186_v6  ;;  %v1060_v9 = vpop.f32.mrb[61].mxu0  ;;  %v1188_v10 = vpop.f32.mrb[61].mxu1 }
 0x1e9   : > { %v1061_v11 = vpop.f32.mrb[62].mxu0  ;;  %v1189_v12 = vpop.f32.mrb[62].mxu1 }
 0x1ea   : > { %v1489_v13 = vmax.f32 %v1425_v7, 0.0  ;;  %v1521_v14 = vmax.f32 %v1457_v8, 0.0  ;;  %v1426_v15 = vadd.f32 %v2486_v17, %v1061_v11  ;;  %v1458_v16 = vadd.f32 %v2486_v17, %v1189_v12  ;;  %v1063_v18 = vpop.f32.mrb[63].mxu0  ;;  %v1191_v19 = vpop.f32.mrb[63].mxu1 }
 0x1ec   : > { %1553 = vst [vmem:[%s2494_s24 + $0xf0] sm:$0xff] %v1489_v13  ;;  %1585 = vst [vmem:[%s2494_s24 + $0x1f0] sm:$0xff] %v1521_v14  ;;  %v1490_v20 = vmax.f32 %v1426_v15, 0.0  ;;  %v1522_v21 = vmax.f32 %v1458_v16, 0.0 }
 0x1ee   : > { %1554 = vst [vmem:[%s2494_s24 + $0xf8] sm:$0xff] %v1490_v20  ;;  %1586 = vst [vmem:[%s2494_s24 + $0x1f8] sm:$0xff] %v1522_v21 }
 0x1ef   : > { %2115 = shalt.err (!%p2112_p5)
}
 0x1f0   : > { %s2116_s25 = scalar_lea.hbm %s2621_s26, 8192  ;;  %s2120_s6 = scalar_lea.hbm %s2678_s3, 32768 }
 0x1f1   : > { %p2117_p9 = scmp.ne.s32.totalorder %s2621_s26, %s2116_s25  ;;  %p2121_p3 = scmp.lt.u32.totalorder %s2621_s26, %s2678_s3 }
 0x1f2   : > { %p2122_p7 = scmp.lt.u32.totalorder %s2120_s6, %s2116_s25  ;;  %p2124_p4 = scmp.lt.u32.totalorder %s2116_s25, %s2621_s26 }
 0x1f3   : > { %p2118_p1 = pnand %p2117_p9, %p2315_p11 }
 0x1f4   : > { %p2123_p13 = por %p2122_p7, %p2121_p3 }
 0x1f5   : > { %p2119_p2 = pneg %p2118_p1 }
 0x1f6   : > { %p2125_p6 = por %p2124_p4, %p2123_p13 }
 0x1f8   : > { %p2126_p8 = pnand %p2125_p6, %p2119_p2 }
 0x1fa   : > { %2129 = shalt.err (!%p2126_p8)
}
 0x1fb   : > { %s2198_s24 = smov 128   ;;  %s2199_s9 = smov 8  }
 0x1fc   : > { %1858 = dma.vmem_to_hbm [thread:$0]  (%p2315_p11), %s2623_s10, 8192, %s2621_s26, %s1588_s15, %s2198_s24, %s2198_s24, %s2199_s9  }
 0x1fd PF: > { %p1875_p12 = scmp.ge.s32.totalorder %s2188_s17, 2  ;;  %s1617_s11 = sand.u32 1, %s2168_s12  }
 0x1fe   : > { %p2696_p10 = scmp.ne.s32.totalorder %s2686_s23, 0  ;;  %s1618_s18 = scalar_lea.sflag [#allocation5], %s1617_s11 }
 0x200   : > { %p1869_p0 = pnand %p1875_p12, %p2696_p10 }
 0x202   : > { %2163 = dma.done.wait (!%p1869_p0), %s1618_s18, 8192  }
 0x203   : > { %2165 = vsyncadd (!%p1869_p0), %s1618_s18, 4294959104  ;;  %s20_s17 = sadd.s32 1, %s2188_s17   ;;  %s2697_s12 = smov %s2172_s13 }
 0x204   : > { %p17_p5 = scmp.ge.s32.totalorder %s20_s17, 6   ;;  %s2698_s13 = smov %s2176_s14 }
 0x205   : > { %s2699_s14 = smov %s2324_s5  ;;  %s2700_s15 = smov %s2184_s16 }
 0x206   : > { %s2701_s16 = smov %s2703_s28  ;;  %19 = sbr.rel (!%p17_p5) target bundleno = 7 (0x7), region = 93 }
 0x20d   :  { %1623 = vsyncpa [#allocation4], 1 }
 0x20e   :  { %1625 = vsyncpa [#allocation4 + $0x1], 1 }
 0x20f   :  { %1626 = vsyncpa [#allocation7], 1 }
 0x210   :  { %1627 = vsyncpa [#allocation5], 1 }
 0x211   :  { %1629 = vsyncpa [#allocation5 + $0x1], 1 }

</bundles_post_ra>
